<compile_context>
chip_gen: v5e
topology: v5e:2x2
jax: 0.10.0
libtpu: 0.0.40
codegen_flags: <defaults>
</compile_context>

<pallas_src>
import functools

import jax
import jax.numpy as jnp
from jax.experimental import pallas as pl
from jax.experimental.pallas import tpu as pltpu


def _conv_rows_kernel(x_ref, w_ref, b_ref, o_ref, *, k, th, wp, n_tiles):
    """Fused-tap conv for one (batch, row-tile) grid step (stride-1 geometry).

    x_ref: (C_in, (HP+1)*WP)  zero-padded image, rows*cols flattened (resident per batch)
    w_ref: (k*k, C_out, C_in) per-tap weight matrices
    b_ref: (C_out, 1)         bias
    o_ref: (C_out, th*wp)     `th` output rows, full padded width per row (cropped in XLA)
    """
    c_out = w_ref.shape[1]
    tp = th * wp

    if n_tiles > 1:
        row0 = pl.multiple_of(pl.program_id(1) * th, th)
    else:
        row0 = 0  # static base -> fully static (unaligned) lane slices

    acc = jnp.zeros((c_out, tp), dtype=jnp.float32)
    # Statically unrolled k*k taps; each is one contiguous lane slice + one MXU matmul.
    for kh in range(k):
        for kw in range(k):
            start = (row0 + kh) * wp + kw
            xs = x_ref[:, pl.ds(start, tp)]                 # (C_in, th*wp)
            w_tap = w_ref[kh * k + kw]                      # (C_out, C_in)
            acc = acc + jnp.dot(w_tap, xs, preferred_element_type=jnp.float32)

    o_ref[...] = (acc + b_ref[...]).astype(o_ref.dtype)


def _choose_row_tile(oh, wp, c_out, itemsize, budget_bytes=8 * 1024 * 1024):
    """Pick TH | OH such that TH*WP is 128-lane aligned (or the full extent), within budget."""
    cands = [t for t in range(1, oh + 1)
             if oh % t == 0 and ((t * wp) % 128 == 0 or t == oh)]
    for t in sorted(cands, reverse=True):
        out_block = 2 * c_out * t * wp * itemsize   # double-buffered output block
        acc_live = c_out * t * wp * 4               # f32 accumulator value
        if out_block + acc_live <= budget_bytes:
            return t
    return min(cands)


def simple_conv2d(x, weight, bias, *, stride=1, padding=0):
    """Pallas implementation of SimpleConv2d.forward (intended conv2d semantics)."""
    B, C_in, H, W = x.shape
    C_out, C_in_w, k, k2 = weight.shape
    assert C_in_w == C_in and k2 == k

    OH = (H + 2 * padding - k) // stride + 1
    OW = (W + 2 * padding - k) // stride + 1

    # The fused kernel computes the stride-1 output; stride>1 is an exact subsample of it.
    HP, WP = H + 2 * padding, W + 2 * padding
    OH1, OW1 = HP - k + 1, WP - k + 1

    # Zero-pad once (+1 extra zero row so tap-shifted flat slices never read OOB),
    # then flatten (rows, cols) so each tap is one contiguous lane slice. No k*k blow-up.
    xp = jnp.pad(x, ((0, 0), (0, 0), (padding, padding + 1), (padding, padding)))
    x_lin = xp.reshape(B, C_in, (HP + 1) * WP)

    w_taps = weight.transpose(2, 3, 0, 1).reshape(k * k, C_out, C_in)  # (tap, C_out, C_in)
    b2d = bias.reshape(C_out, 1).astype(jnp.float32)

    TH = _choose_row_tile(OH1, WP, C_out, x.dtype.itemsize)
    n_t = OH1 // TH
    TP = TH * WP

    kern = functools.partial(_conv_rows_kernel, k=k, th=TH, wp=WP, n_tiles=n_t)
    flops = 2 * B * OH1 * WP * k * k * C_in * C_out
    bytes_accessed = ((x_lin.size + B * C_out * OH1 * WP) * x.dtype.itemsize
                      + (w_taps.size + b2d.size) * 4)

    out_wide = pl.pallas_call(
        kern,
        out_shape=jax.ShapeDtypeStruct((B, C_out, OH1 * WP), x.dtype),
        grid_spec=pltpu.PrefetchScalarGridSpec(
            num_scalar_prefetch=0,
            grid=(B, n_t),
            in_specs=[
                # whole padded image of batch b stays resident across the row-tile axis
                pl.BlockSpec((pl.Squeezed(), C_in, (HP + 1) * WP), lambda b, t: (b, 0, 0)),
                pl.BlockSpec((k * k, C_out, C_in), lambda b, t: (0, 0, 0)),
                pl.BlockSpec((C_out, 1), lambda b, t: (0, 0)),
            ],
            out_specs=pl.BlockSpec((pl.Squeezed(), C_out, TP), lambda b, t: (b, 0, t)),
        ),
        compiler_params=pltpu.CompilerParams(
            dimension_semantics=("parallel", "parallel"),
            vmem_limit_bytes=48 * 1024 * 1024,  # explicit budget; leaves headroom on v7x (64 MiB)
        ),
        cost_estimate=pl.CostEstimate(flops=flops, transcendentals=0,
                                      bytes_accessed=bytes_accessed),
    )(x_lin, w_taps, b2d)

    # (B, C_out, OH1*WP) -> NCHW stride-1 output: free reshape + cheap column crop.
    out1 = out_wide.reshape(B, C_out, OH1, WP)[:, :, :, :OW1]
    if stride == 1:
        return out1
    # TODO(synk): stride>1 over-computes by ~stride**2 (subsamples the stride-1 result);
    # a dedicated strided-tap kernel would avoid the waste.
    return out1[:, :, ::stride, ::stride][:, :, :OH, :OW]


if __name__ == "__main__":
    B, C_in, C_out, H, W = 2, 4, 8, 16, 16
    k, stride, padding = 3, 1, 1

    key = jax.random.PRNGKey(0)
    kx, kw_key = jax.random.split(key)
    x = jax.random.normal(kx, (B, C_in, H, W), dtype=jnp.float32)
    weight = jax.random.normal(kw_key, (C_out, C_in, k, k), dtype=jnp.float32)  # ~ torch.randn
    bias = jnp.zeros((C_out,), dtype=jnp.float32)                               # ~ torch.zeros

    out = jax.block_until_ready(simple_conv2d(x, weight, bias, stride=stride, padding=padding))

    # sanity check against a pure-JAX reference of the intended conv semantics
    ref = jax.lax.conv_general_dilated(
        x, weight, window_strides=(stride, stride),
        padding=[(padding, padding), (padding, padding)],
        dimension_numbers=("NCHW", "OIHW", "NCHW"),
    ) + bias.reshape(1, C_out, 1, 1)

    assert out.shape == ref.shape
    assert jnp.allclose(out, ref, atol=1e-4, rtol=1e-4)
    print("KERNEL_OK")
</pallas_src>

<mosaic_0001>
module attributes {stable_mosaic.version = 11 : i64} {
  func.func @_conv_rows_kernel(%arg0: i32, %arg1: i32, %arg2: memref<1x4x342xf32, #tpu.memory_space<vmem>>, %arg3: memref<9x8x4xf32, #tpu.memory_space<vmem>>, %arg4: memref<8x1xf32, #tpu.memory_space<vmem>>, %arg5: memref<1x8x288xf32, #tpu.memory_space<vmem>>) attributes {dimension_semantics = [#tpu.dimension_semantics<parallel>, #tpu.dimension_semantics<parallel>], iteration_bounds = array<i64: 2, 1>, scalar_prefetch = 0 : i64, scratch_operands = 0 : i64, tpu.core_type = #tpu.core_type<tc>, window_params = [{transform_indices = @transform_0, window_bounds = array<i64: 1, 4, 342>}, {pipeline_mode = #tpu.pipeline_mode<synchronous>, transform_indices = @transform_1, window_bounds = array<i64: 9, 8, 4>}, {pipeline_mode = #tpu.pipeline_mode<synchronous>, transform_indices = @transform_2, window_bounds = array<i64: 8, 1>}, {transform_indices = @transform_3, window_bounds = array<i64: 1, 8, 288>}]} {
    %cst = arith.constant 0.000000e+00 : f32
    %0 = vector.broadcast %cst : f32 to vector<8x288xf32>
    %c0 = arith.constant 0 : index
    %c0_0 = arith.constant 0 : index
    %c0_1 = arith.constant 0 : index
    %1 = vector.load %arg2[%c0, %c0_0, %c0_1] : memref<1x4x342xf32, #tpu.memory_space<vmem>>, vector<1x4x288xf32>
    %2 = vector.shape_cast %1 : vector<1x4x288xf32> to vector<4x288xf32>
    %c0_2 = arith.constant 0 : index
    %c0_3 = arith.constant 0 : index
    %c0_4 = arith.constant 0 : index
    %3 = vector.load %arg3[%c0_2, %c0_3, %c0_4] : memref<9x8x4xf32, #tpu.memory_space<vmem>>, vector<1x8x4xf32>
    %4 = vector.shape_cast %3 : vector<1x8x4xf32> to vector<8x4xf32>
    %cst_5 = arith.constant dense<0.000000e+00> : vector<8x288xf32>
    %5 = tpu.matmul %4, %2, %cst_5 {dimension_numbers = #tpu.dot_dimension_numbers<[1], [0], [0], [1], [0, 0, 1, 1], [], []>} : vector<8x4xf32>, vector<4x288xf32>, vector<8x288xf32> -> vector<8x288xf32>
    %6 = arith.addf %0, %5 : vector<8x288xf32>
    %c0_6 = arith.constant 0 : index
    %c0_7 = arith.constant 0 : index
    %c1 = arith.constant 1 : index
    %7 = vector.load %arg2[%c0_6, %c0_7, %c1] : memref<1x4x342xf32, #tpu.memory_space<vmem>>, vector<1x4x288xf32>
    %8 = vector.shape_cast %7 : vector<1x4x288xf32> to vector<4x288xf32>
    %c1_8 = arith.constant 1 : index
    %c0_9 = arith.constant 0 : index
    %c0_10 = arith.constant 0 : index
    %9 = vector.load %arg3[%c1_8, %c0_9, %c0_10] : memref<9x8x4xf32, #tpu.memory_space<vmem>>, vector<1x8x4xf32>
    %10 = vector.shape_cast %9 : vector<1x8x4xf32> to vector<8x4xf32>
    %cst_11 = arith.constant dense<0.000000e+00> : vector<8x288xf32>
    %11 = tpu.matmul %10, %8, %cst_11 {dimension_numbers = #tpu.dot_dimension_numbers<[1], [0], [0], [1], [0, 0, 1, 1], [], []>} : vector<8x4xf32>, vector<4x288xf32>, vector<8x288xf32> -> vector<8x288xf32>
    %12 = arith.addf %6, %11 : vector<8x288xf32>
    %c0_12 = arith.constant 0 : index
    %c0_13 = arith.constant 0 : index
    %c2 = arith.constant 2 : index
    %13 = vector.load %arg2[%c0_12, %c0_13, %c2] : memref<1x4x342xf32, #tpu.memory_space<vmem>>, vector<1x4x288xf32>
    %14 = vector.shape_cast %13 : vector<1x4x288xf32> to vector<4x288xf32>
    %c2_14 = arith.constant 2 : index
    %c0_15 = arith.constant 0 : index
    %c0_16 = arith.constant 0 : index
    %15 = vector.load %arg3[%c2_14, %c0_15, %c0_16] : memref<9x8x4xf32, #tpu.memory_space<vmem>>, vector<1x8x4xf32>
    %16 = vector.shape_cast %15 : vector<1x8x4xf32> to vector<8x4xf32>
    %cst_17 = arith.constant dense<0.000000e+00> : vector<8x288xf32>
    %17 = tpu.matmul %16, %14, %cst_17 {dimension_numbers = #tpu.dot_dimension_numbers<[1], [0], [0], [1], [0, 0, 1, 1], [], []>} : vector<8x4xf32>, vector<4x288xf32>, vector<8x288xf32> -> vector<8x288xf32>
    %18 = arith.addf %12, %17 : vector<8x288xf32>
    %c0_18 = arith.constant 0 : index
    %c0_19 = arith.constant 0 : index
    %c18 = arith.constant 18 : index
    %19 = vector.load %arg2[%c0_18, %c0_19, %c18] : memref<1x4x342xf32, #tpu.memory_space<vmem>>, vector<1x4x288xf32>
    %20 = vector.shape_cast %19 : vector<1x4x288xf32> to vector<4x288xf32>
    %c3 = arith.constant 3 : index
    %c0_20 = arith.constant 0 : index
    %c0_21 = arith.constant 0 : index
    %21 = vector.load %arg3[%c3, %c0_20, %c0_21] : memref<9x8x4xf32, #tpu.memory_space<vmem>>, vector<1x8x4xf32>
    %22 = vector.shape_cast %21 : vector<1x8x4xf32> to vector<8x4xf32>
    %cst_22 = arith.constant dense<0.000000e+00> : vector<8x288xf32>
    %23 = tpu.matmul %22, %20, %cst_22 {dimension_numbers = #tpu.dot_dimension_numbers<[1], [0], [0], [1], [0, 0, 1, 1], [], []>} : vector<8x4xf32>, vector<4x288xf32>, vector<8x288xf32> -> vector<8x288xf32>
    %24 = arith.addf %18, %23 : vector<8x288xf32>
    %c0_23 = arith.constant 0 : index
    %c0_24 = arith.constant 0 : index
    %c19 = arith.constant 19 : index
    %25 = vector.load %arg2[%c0_23, %c0_24, %c19] : memref<1x4x342xf32, #tpu.memory_space<vmem>>, vector<1x4x288xf32>
    %26 = vector.shape_cast %25 : vector<1x4x288xf32> to vector<4x288xf32>
    %c4 = arith.constant 4 : index
    %c0_25 = arith.constant 0 : index
    %c0_26 = arith.constant 0 : index
    %27 = vector.load %arg3[%c4, %c0_25, %c0_26] : memref<9x8x4xf32, #tpu.memory_space<vmem>>, vector<1x8x4xf32>
    %28 = vector.shape_cast %27 : vector<1x8x4xf32> to vector<8x4xf32>
    %cst_27 = arith.constant dense<0.000000e+00> : vector<8x288xf32>
    %29 = tpu.matmul %28, %26, %cst_27 {dimension_numbers = #tpu.dot_dimension_numbers<[1], [0], [0], [1], [0, 0, 1, 1], [], []>} : vector<8x4xf32>, vector<4x288xf32>, vector<8x288xf32> -> vector<8x288xf32>
    %30 = arith.addf %24, %29 : vector<8x288xf32>
    %c0_28 = arith.constant 0 : index
    %c0_29 = arith.constant 0 : index
    %c20 = arith.constant 20 : index
    %31 = vector.load %arg2[%c0_28, %c0_29, %c20] : memref<1x4x342xf32, #tpu.memory_space<vmem>>, vector<1x4x288xf32>
    %32 = vector.shape_cast %31 : vector<1x4x288xf32> to vector<4x288xf32>
    %c5 = arith.constant 5 : index
    %c0_30 = arith.constant 0 : index
    %c0_31 = arith.constant 0 : index
    %33 = vector.load %arg3[%c5, %c0_30, %c0_31] : memref<9x8x4xf32, #tpu.memory_space<vmem>>, vector<1x8x4xf32>
    %34 = vector.shape_cast %33 : vector<1x8x4xf32> to vector<8x4xf32>
    %cst_32 = arith.constant dense<0.000000e+00> : vector<8x288xf32>
    %35 = tpu.matmul %34, %32, %cst_32 {dimension_numbers = #tpu.dot_dimension_numbers<[1], [0], [0], [1], [0, 0, 1, 1], [], []>} : vector<8x4xf32>, vector<4x288xf32>, vector<8x288xf32> -> vector<8x288xf32>
    %36 = arith.addf %30, %35 : vector<8x288xf32>
    %c0_33 = arith.constant 0 : index
    %c0_34 = arith.constant 0 : index
    %c36 = arith.constant 36 : index
    %37 = vector.load %arg2[%c0_33, %c0_34, %c36] : memref<1x4x342xf32, #tpu.memory_space<vmem>>, vector<1x4x288xf32>
    %38 = vector.shape_cast %37 : vector<1x4x288xf32> to vector<4x288xf32>
    %c6 = arith.constant 6 : index
    %c0_35 = arith.constant 0 : index
    %c0_36 = arith.constant 0 : index
    %39 = vector.load %arg3[%c6, %c0_35, %c0_36] : memref<9x8x4xf32, #tpu.memory_space<vmem>>, vector<1x8x4xf32>
    %40 = vector.shape_cast %39 : vector<1x8x4xf32> to vector<8x4xf32>
    %cst_37 = arith.constant dense<0.000000e+00> : vector<8x288xf32>
    %41 = tpu.matmul %40, %38, %cst_37 {dimension_numbers = #tpu.dot_dimension_numbers<[1], [0], [0], [1], [0, 0, 1, 1], [], []>} : vector<8x4xf32>, vector<4x288xf32>, vector<8x288xf32> -> vector<8x288xf32>
    %42 = arith.addf %36, %41 : vector<8x288xf32>
    %c0_38 = arith.constant 0 : index
    %c0_39 = arith.constant 0 : index
    %c37 = arith.constant 37 : index
    %43 = vector.load %arg2[%c0_38, %c0_39, %c37] : memref<1x4x342xf32, #tpu.memory_space<vmem>>, vector<1x4x288xf32>
    %44 = vector.shape_cast %43 : vector<1x4x288xf32> to vector<4x288xf32>
    %c7 = arith.constant 7 : index
    %c0_40 = arith.constant 0 : index
    %c0_41 = arith.constant 0 : index
    %45 = vector.load %arg3[%c7, %c0_40, %c0_41] : memref<9x8x4xf32, #tpu.memory_space<vmem>>, vector<1x8x4xf32>
    %46 = vector.shape_cast %45 : vector<1x8x4xf32> to vector<8x4xf32>
    %cst_42 = arith.constant dense<0.000000e+00> : vector<8x288xf32>
    %47 = tpu.matmul %46, %44, %cst_42 {dimension_numbers = #tpu.dot_dimension_numbers<[1], [0], [0], [1], [0, 0, 1, 1], [], []>} : vector<8x4xf32>, vector<4x288xf32>, vector<8x288xf32> -> vector<8x288xf32>
    %48 = arith.addf %42, %47 : vector<8x288xf32>
    %c0_43 = arith.constant 0 : index
    %c0_44 = arith.constant 0 : index
    %c38 = arith.constant 38 : index
    %49 = vector.load %arg2[%c0_43, %c0_44, %c38] : memref<1x4x342xf32, #tpu.memory_space<vmem>>, vector<1x4x288xf32>
    %50 = vector.shape_cast %49 : vector<1x4x288xf32> to vector<4x288xf32>
    %c8 = arith.constant 8 : index
    %c0_45 = arith.constant 0 : index
    %c0_46 = arith.constant 0 : index
    %51 = vector.load %arg3[%c8, %c0_45, %c0_46] : memref<9x8x4xf32, #tpu.memory_space<vmem>>, vector<1x8x4xf32>
    %52 = vector.shape_cast %51 : vector<1x8x4xf32> to vector<8x4xf32>
    %cst_47 = arith.constant dense<0.000000e+00> : vector<8x288xf32>
    %53 = tpu.matmul %52, %50, %cst_47 {dimension_numbers = #tpu.dot_dimension_numbers<[1], [0], [0], [1], [0, 0, 1, 1], [], []>} : vector<8x4xf32>, vector<4x288xf32>, vector<8x288xf32> -> vector<8x288xf32>
    %54 = arith.addf %48, %53 : vector<8x288xf32>
    %c0_48 = arith.constant 0 : index
    %c0_49 = arith.constant 0 : index
    %55 = vector.load %arg4[%c0_48, %c0_49] : memref<8x1xf32, #tpu.memory_space<vmem>>, vector<8x1xf32>
    %56 = vector.broadcast %55 : vector<8x1xf32> to vector<8x288xf32>
    %57 = arith.addf %54, %56 : vector<8x288xf32>
    %c0_50 = arith.constant 0 : index
    %c0_51 = arith.constant 0 : index
    %c0_52 = arith.constant 0 : index
    %58 = vector.load %arg5[%c0_50, %c0_51, %c0_52] : memref<1x8x288xf32, #tpu.memory_space<vmem>>, vector<1x8x288xf32>
    %59 = vector.shape_cast %58 : vector<1x8x288xf32> to vector<8x288xf32>
    %60 = vector.shape_cast %57 : vector<8x288xf32> to vector<1x8x288xf32>
    tpu.vector_store %arg5[%c0_50, %c0_51, %c0_52], %60 {strides = array<i32>} : memref<1x8x288xf32, #tpu.memory_space<vmem>>, vector<1x8x288xf32>,
    return
  }
  func.func @transform_0(%arg0: i32, %arg1: i32) -> (i32, i32, i32) {
    %c0_i32 = arith.constant 0 : i32
    %c0_i32_0 = arith.constant 0 : i32
    %c0_i32_1 = arith.constant 0 : i32
    return %arg0, %c0_i32, %c0_i32_0 : i32, i32, i32
  }
  func.func @transform_1(%arg0: i32, %arg1: i32) -> (i32, i32, i32) {
    %c0_i32 = arith.constant 0 : i32
    %c0_i32_0 = arith.constant 0 : i32
    %c0_i32_1 = arith.constant 0 : i32
    %c0_i32_2 = arith.constant 0 : i32
    return %c0_i32, %c0_i32_0, %c0_i32_1 : i32, i32, i32
  }
  func.func @transform_2(%arg0: i32, %arg1: i32) -> (i32, i32) {
    %c0_i32 = arith.constant 0 : i32
    %c0_i32_0 = arith.constant 0 : i32
    %c0_i32_1 = arith.constant 0 : i32
    return %c0_i32, %c0_i32_0 : i32, i32
  }
  func.func @transform_3(%arg0: i32, %arg1: i32) -> (i32, i32, i32) {
    %c0_i32 = arith.constant 0 : i32
    %c0_i32_0 = arith.constant 0 : i32
    return %arg0, %c0_i32, %arg1 : i32, i32, i32
  }
}

</mosaic_0001>

<bundles_post_ra>
// kernel: tpu_custom_call.1
= control target key start
LH: loop header
LB: loop body
LE: loop exit
PB: predicated region body
PF: predicated region fallthrough
CT: control target
= control target key end

     0   :  { %8 = vsyncpa [#allocation3], 0  ;;  %s1573_s0 = inlined_call_operand.vmem [shape: f32[2,4,342], index: 0, kind: input, shape index: {}]   ;;  %s1574_s1 = inlined_call_operand.vmem [shape: f32[9,8,4], index: 1, kind: input, shape index: {}]   ;;  %s1575_s2 = inlined_call_operand.vmem [shape: f32[8,1], index: 2, kind: input, shape index: {}]   ;;  %s1576_s3 = inlined_call_operand.hbm [shape: f32[2,8,288], index: 3, kind: output, shape index: {}]  }
   0x1   :  { %10 = vsyncpa [#allocation3 + $0x1], 0  ;;  %s1353_s12 = smov 0   ;;  %s1355_s13 = smov 0  }
   0x2   :  { %s1357_s14 = smov 0   ;;  %s1359_s15 = smov 0  }
   0x3   :  { %s1361_s16 = smov 0   ;;  %s1363_s17 = smov 0  }
   0x4 LB: > { %s1105_s18 = sadd.s32 4294967295, %s1322_s17   ;;  %s1106_s19 = sadd.s32 4294967294, %s1322_s17   ;;  %s1322_s17 = sphi %s1363_s17, %s16_s17   ;;  %s1318_s16 = sphi %s1361_s16, %s1583_s16   ;;  %s1314_s15 = sphi %s1359_s15, %s1582_s15   ;;  %s1310_s14 = sphi %s1357_s14, %s1581_s14   ;;  %s1306_s13 = sphi %s1355_s13, %s1580_s13   ;;  %s1302_s12 = sphi %s1353_s12, %s1579_s12  }
   0x5   : > { %s28_s20 = sadd.s32 1, %s1318_s16  ;;  %s105_s21 = sadd.s32 1, %s1310_s14 }
   0x6   : > { %p30_p0 = scmp.ge.s32.totalorder %s28_s20, 2  ;;  %p115_p1 = scmp.ne.s32.totalorder %s1310_s14, %s1306_s13 }
   0x7   : > { %p116_p2 = scmp.eq.s32.totalorder %s1105_s18, 1  ;;  %p121_p3 = scmp.ne.s32.totalorder %s1306_s13, %s1302_s12 }
   0x8   : > { %s1585_s20 = smov (%p30_p0, %s28_s20), 0  ;;  %p122_p5 = scmp.eq.s32.totalorder %s1106_s19, 1 }
   0x9   : > { %p1393_p4 = por %p116_p2, %p115_p1  ;;  %s100_s23 = ssub.s32 %s1318_s16, %s1585_s20 }
   0xa   : > { %p1109_p6 = scmp.ge.s32.totalorder %s1322_s17, 1  ;;  %p103_p7 = scmp.eq.s32.totalorder %s100_s23, 0 }
   0xb   : > { %p1400_p8 = por %p122_p5, %p121_p3  ;;  %p154_p9 = scmp.lt.s32.totalorder %s1322_s17, 3 }
   0xc   : > { %s1406_s25 = scalar_select %p103_p7, %s1310_s14, %s105_s21  }
   0xd   : > { %p155_p10 = pnand %p1109_p6, %p154_p9 }
   0xe   : > { %p178_p11 = scmp.lt.s32.totalorder (!%p155_p10), %s1314_s15, 1  ;;  %s1324_s4 = smov (!%p155_p10), 127  }
   0xf   : > { %158 = sbr.rel (%p155_p10) target bundleno = 357 (0x165), region = 32  ;;  %s1325_s5 = smov (!%p155_p10), 126  }
  0x10   : > { %s1326_s6 = smov (!%p155_p10), 110   ;;  %s1327_s7 = smov (!%p155_p10), 109  }
  0x11   : > { %s1328_s8 = smov (!%p155_p10), 108   ;;  %s1329_s9 = smov (!%p155_p10), 92  }
  0x12   : > { %s1330_s10 = smov (!%p155_p10), 91   ;;  %s1331_s11 = smov (!%p155_p10), 90  }
  0x13   : > { %s175_s23 = sand.u32 (!%p155_p10), 1, %s1306_s13  }
  0x14   : > { %s179_s26 = scalar_select %p178_p11, %s1314_s15, 1  ;;  %vm210_vm0 = vcmask 1043456   ;;  %vm206_vm1 = vcmask 31744   ;;  %v186_v36 = vld [vmem:[%s1574_s1] sm:$0xff]  ;;  %vm203_vm2 = vcmask 1039360   ;;  %v1111_v38 = vld [vmem:[%s1574_s1 + $0x8] sm:$0xff] }
  0x15   : > { %vm370_vm3 = vcmask 1031168   ;;  %v1124_v43 = vld [vmem:[%s1574_s1 + $0x10] sm:$0xff]  ;;  %vm463_vm4 = vcmask 900096   ;;  %v1131_v53 = vld [vmem:[%s1574_s1 + $0x18] sm:$0xff]  ;;  %vm556_vm5 = vcmask 891904   ;;  %v1138_v59 = vld [vmem:[%s1574_s1 + $0x20] sm:$0xff] }
  0x16   : > { %s1177_s27 = smul.u32 12, %s179_s26  ;;  %v1003_v62 = vld [vmem:[%s1575_s2] sm:$0xff]  ;;  %v1332_v63 = vmov 0   ;;  %vm649_vm6 = vcmask 883712   ;;  %vm742_vm7 = vcmask 752640   ;;  %vm835_vm8 = vcmask 744448  }
  0x17   : > { %1243 = vset.pattern.permute.xlu0 %v1332_v63  ;;  %vm928_vm9 = vcmask 736256   ;;  %s1176_s26 = smul.u32 24, %s175_s23  ;;  %vm1014_vm10 = vcmask 261120  }
  0x18   : > { %s1413_s30 = scalar_lea.vmem %s1573_s0, %s1177_s27  ;;  %s1178_s27 = smul.u32 24, %s1314_s15 }
  0x19   : > { %v185_v0 = vld [vmem:[%s1413_s30 + $0x8] sm:$0xf]  ;;  %v1417_v1 = vld [vmem:[%s1413_s30] sm:$0xff] }
  0x1a   : > { %193 = vst [vmem:[#allocation1 + $0x10] ss:$2 sm:$0xff] %v185_v0  ;;  %v353_v5 = vld [vmem:[%s1413_s30 + $0x8] sm:$0xf] }
  0x1b   : > { %191 = vst [vmem:[#allocation1] ss:$2 sm:$0xff] %v1417_v1  ;;  %v446_v9 = vld [vmem:[%s1413_s30 + $0x8] sm:$0xf] }
  0x1c   : > { %v539_v13 = vld [vmem:[%s1413_s30 + $0x8] sm:$0xf] }
  0x1d   : > { %v632_v17 = vld [vmem:[%s1413_s30 + $0x8] sm:$0xf] }
  0x1e   : > { %v725_v21 = vld [vmem:[%s1413_s30 + $0x8] sm:$0xf] }
  0x1f   : > { %v818_v25 = vld [vmem:[%s1413_s30 + $0x8] sm:$0xf] }
  0x20   : > { %v911_v29 = vld [vmem:[%s1413_s30 + $0x8] sm:$0xf]  ;;  %s1030_s30 = scalar_lea.hbm %s1576_s3, %s1178_s27 }
  0x21   : > { %v196_v2 = vld.sshfl [vmem:[#allocation1 + $0x10] sm:$0xff pattern:$0x75316420] }
  0x22   : > { %201 = vrot.lane.b32.xlu0 %v196_v2, %s1324_s4  ;;  %279 = vst [vmem:[#allocation1 + $0x10] ss:$2 sm:$0xff] %v185_v0  ;;  %v195_v3 = vld.sshfl [vmem:[#allocation1 + $0x8] sm:$0xff pattern:$0x75316420] }
  0x23   : > { %199 = vrot.lane.b32.xlu1 %v195_v3, %s1324_s4  ;;  %v194_v4 = vld.sshfl [vmem:[#allocation1] sm:$0xff pattern:$0x75316420]  ;;  %v1145_v2 = vld [vmem:[%s1574_s1 + $0x28] sm:$0xff] }
  0x24   : > { %277 = vst [vmem:[#allocation1] ss:$2 sm:$0xff] %v1417_v1 }
  0x29   : > { %v1422_v6 = vld.sshfl [vmem:[#allocation1 + $0x10] sm:$0xff pattern:$0x75316420] }
  0x2a   : > { %197 = vrot.lane.b32.xlu0 %v194_v4, %s1324_s4  ;;  %360 = vst [vmem:[#allocation1 + $0x10] ss:$2 sm:$0xff] %v353_v5  ;;  %s177_s4 = scalar_lea.vmem [#allocation2], %s1176_s26 }
  0x2b   : > { %v1424_v7 = vld.sshfl [vmem:[#allocation1] sm:$0xff pattern:$0x75316420]  ;;  %v1426_v8 = vld.sshfl [vmem:[#allocation1 + $0x8] sm:$0xff pattern:$0x75316420] }
  0x2c   : > { %358 = vst [vmem:[#allocation1] ss:$2 sm:$0xff] %v1417_v1  ;;  %1118 = vmatpush.msk.msra.mxu3 %vm210_vm0, %v1424_v7  ;;  %s1032_s15 = sshll.u32 %s177_s4, 4  ;;  %s1033_s15 = int_to_ptr.vmem [resolvable:$true] %s1032_s15 }
  0x2d   : > { %1119 = vmatmul.msk.f32.vlgmr.msra.gmra.mxu3 %vm206_vm1, %v186_v36 }
  0x31   : > { %v363_v10 = vld.sshfl [vmem:[#allocation1 + $0x10] sm:$0xff pattern:$0x75316420] }
  0x32   : > { %453 = vst [vmem:[#allocation1 + $0x10] ss:$2 sm:$0xff] %v446_v9 }
  0x33   : > { %v361_v11 = vld.sshfl [vmem:[#allocation1] sm:$0xff pattern:$0x75316420]  ;;  %v362_v12 = vld.sshfl [vmem:[#allocation1 + $0x8] sm:$0xff pattern:$0x75316420] }
  0x34   : > { %364 = vrot.lane.b32.xlu1 %v361_v11, %s1325_s5  ;;  %451 = vst [vmem:[#allocation1] ss:$2 sm:$0xff] %v1417_v1  ;;  %366 = vrot.lane.b32.xlu2 %v362_v12, %s1325_s5 }
  0x39   : > { %v456_v14 = vld.sshfl [vmem:[#allocation1 + $0x10] sm:$0xff pattern:$0x75316420] }
  0x3a   : > { %546 = vst [vmem:[#allocation1 + $0x10] ss:$2 sm:$0xff] %v539_v13 }
  0x3b   : > { %v455_v15 = vld.sshfl [vmem:[#allocation1 + $0x8] sm:$0xff pattern:$0x75316420]  ;;  %v454_v16 = vld.sshfl [vmem:[#allocation1] sm:$0xff pattern:$0x75316420] }
  0x3c   : > { %461 = vrot.lane.b32.xlu1 %v456_v14, %s1326_s6  ;;  %459 = vrot.lane.b32.xlu0 %v455_v15, %s1326_s6  ;;  %544 = vst [vmem:[#allocation1] ss:$2 sm:$0xff] %v1417_v1  ;;  %v1159_v14 = vld [vmem:[%s1574_s1 + $0x38] sm:$0xff] }
  0x3d   : > { %368 = vrot.lane.b32.xlu2 %v363_v10, %s1325_s5  ;;  %v1152_v10 = vld [vmem:[%s1574_s1 + $0x30] sm:$0xff]  ;;  %s1034_s5 = sshll.u32 %s1030_s30, 4  ;;  %s1035_s5 = int_to_ptr.hbm [resolvable:$true] %s1034_s5 }
  0x41   : > { %v549_v18 = vld.sshfl [vmem:[#allocation1 + $0x10] sm:$0xff pattern:$0x75316420] }
  0x42   : > { %639 = vst [vmem:[#allocation1 + $0x10] ss:$2 sm:$0xff] %v632_v17 }
  0x43   : > { %v548_v19 = vld.sshfl [vmem:[#allocation1 + $0x8] sm:$0xff pattern:$0x75316420]  ;;  %v547_v20 = vld.sshfl [vmem:[#allocation1] sm:$0xff pattern:$0x75316420] }
  0x44   : > { %554 = vrot.lane.b32.xlu0 %v549_v18, %s1327_s7  ;;  %550 = vrot.lane.b32.xlu1 %v547_v20, %s1327_s7  ;;  %637 = vst [vmem:[#allocation1] ss:$2 sm:$0xff] %v1417_v1  ;;  %v1166_v20 = vld [vmem:[%s1574_s1 + $0x40] sm:$0xff] }
  0x45   : > { %457 = vrot.lane.b32.xlu2 %v454_v16, %s1326_s6  ;;  %s1017_s6 = scalar_lea.sflag [#allocation3], %s175_s23 }
  0x49   : > { %v642_v22 = vld.sshfl [vmem:[#allocation1 + $0x10] sm:$0xff pattern:$0x75316420] }
  0x4a   : > { %732 = vst [vmem:[#allocation1 + $0x10] ss:$2 sm:$0xff] %v725_v21 }
  0x4b   : > { %v641_v23 = vld.sshfl [vmem:[#allocation1 + $0x8] sm:$0xff pattern:$0x75316420]  ;;  %v640_v24 = vld.sshfl [vmem:[#allocation1] sm:$0xff pattern:$0x75316420] }
  0x4c   : > { %645 = vrot.lane.b32.xlu1 %v641_v23, %s1328_s8  ;;  %643 = vrot.lane.b32.xlu0 %v640_v24, %s1328_s8  ;;  %730 = vst [vmem:[#allocation1] ss:$2 sm:$0xff] %v1417_v1 }
  0x4d   : > { %552 = vrot.lane.b32.xlu2 %v548_v19, %s1327_s7  ;;  %s1258_s7 = sshra.s32 %s1035_s5, 4  ;;  %s1259_s7 = int_to_ptr.hbm [resolvable:$true] %s1258_s7 }
  0x4e   : > { %p1265_p1 = scmp.lt.s32.totalorder %s1259_s7, %s1576_s3 }
  0x51   : > { %v735_v26 = vld.sshfl [vmem:[#allocation1 + $0x10] sm:$0xff pattern:$0x75316420] }
  0x52   : > { %825 = vst [vmem:[#allocation1 + $0x10] ss:$2 sm:$0xff] %v818_v25 }
  0x53   : > { %v734_v27 = vld.sshfl [vmem:[#allocation1 + $0x8] sm:$0xff pattern:$0x75316420]  ;;  %v733_v28 = vld.sshfl [vmem:[#allocation1] sm:$0xff pattern:$0x75316420] }
  0x54   : > { %647 = vrot.lane.b32.xlu1 %v642_v22, %s1328_s8  ;;  %738 = vrot.lane.b32.xlu0 %v734_v27, %s1329_s9  ;;  %823 = vst [vmem:[#allocation1] ss:$2 sm:$0xff] %v1417_v1  ;;  %s1260_s8 = scalar_lea.hbm %s1259_s7, 24 }
  0x55   : > { %736 = vrot.lane.b32.xlu2 %v733_v28, %s1329_s9  ;;  %p1261_p12 = scmp.ne.s32.totalorder %s1259_s7, %s1260_s8 }
  0x57   : > { %p1262_p13 = pnand %p1261_p12, %p1393_p4 }
  0x59   : > { %v828_v30 = vld.sshfl [vmem:[#allocation1 + $0x10] sm:$0xff pattern:$0x75316420]  ;;  %p1263_p0 = pneg %p1262_p13 }
  0x5a   : > { %918 = vst [vmem:[#allocation1 + $0x10] ss:$2 sm:$0xff] %v911_v29 }
  0x5b   : > { %v827_v31 = vld.sshfl [vmem:[#allocation1 + $0x8] sm:$0xff pattern:$0x75316420]  ;;  %v826_v32 = vld.sshfl [vmem:[#allocation1] sm:$0xff pattern:$0x75316420] }
  0x5c   : > { %833 = vrot.lane.b32.xlu1 %v828_v30, %s1330_s10  ;;  %831 = vrot.lane.b32.xlu0 %v827_v31, %s1330_s10  ;;  %916 = vst [vmem:[#allocation1] ss:$2 sm:$0xff] %v1417_v1 }
  0x5d   : > { %740 = vrot.lane.b32.xlu2 %v735_v26, %s1329_s9 }
  0x61   : > { %v921_v33 = vld.sshfl [vmem:[#allocation1 + $0x10] sm:$0xff pattern:$0x75316420] }
  0x63   : > { %v919_v34 = vld.sshfl [vmem:[#allocation1] sm:$0xff pattern:$0x75316420]  ;;  %v920_v35 = vld.sshfl [vmem:[#allocation1 + $0x8] sm:$0xff pattern:$0x75316420] }
  0x64   : > { %926 = vrot.lane.b32.xlu0 %v921_v33, %s1331_s11  ;;  %922 = vrot.lane.b32.xlu1 %v919_v34, %s1331_s11 }
  0x65   : > { %829 = vrot.lane.b32.xlu2 %v826_v32, %s1330_s10 }
  0x6c   : > { %1006 = vperm.xlu0 %1243, %v1003_v62  }
  0x6d   : > { %924 = vrot.lane.b32.xlu2 %v920_v35, %s1331_s11  ;;  %s1264_s11 = scalar_lea.hbm %s1576_s3, 48 }
  0x6e   : > { %p1266_p2 = scmp.lt.s32.totalorder %s1264_s11, %s1260_s8 }
  0x70   : > { %p1267_p3 = por %p1266_p2, %p1265_p1 }
  0x72   : > { %p1268_p5 = pnand %p1267_p3, %p1263_p0 }
  0x8e   : > { %v367_v37 = vpop.permute.xlu2 %366 }
  0x94   : > { %v202_v39 = vpop.permute.xlu0 %201 }
  0x95   : > { %v200_v40 = vpop.permute.xlu1 %199  ;;  %1116 = vmatpush.msk.msra.mxu2 %vm210_vm0, %v202_v39 }
  0x96   : > { %v205_v41 = vsel %vm203_vm2, %v200_v40, %v202_v39  ;;  %1117 = vmatmul.msk.f32.vlgmr.msra.gmra.mxu2 %vm206_vm1, %v1111_v38 }
  0x97   : > { %1114 = vmatpush.msk.msra.mxu1 %vm210_vm0, %v205_v41  ;;  %v369_v42 = vpop.permute.xlu2 %368 }
  0x98   : > { %1115 = vmatmul.msk.f32.vlgmr.msra.gmra.mxu1 %vm206_vm1, %v1111_v38  ;;  %v372_v44 = vsel %vm370_vm3, %v367_v37, %v369_v42 }
  0x99   : > { %1127 = vmatpush.msk.msrb.mxu3 %vm210_vm0, %v372_v44  ;;  %1122 = vmatpush.msk.msrb.mxu1 %vm210_vm0, %v1422_v6 }
  0x9a   : > { %1128 = vmatmul.msk.f32.vlgmr.msrb.gmra.mxu3 %vm206_vm1, %v1124_v43 }
  0x9c   : > { %v198_v45 = vpop.permute.xlu0 %197 }
  0x9d   : > { %v204_v46 = vsel %vm203_vm2, %v198_v45, %v200_v40 }
  0x9e   : > { %1112 = vmatpush.msk.msra.mxu0 %vm210_vm0, %v204_v46 }
  0x9f   : > { %1113 = vmatmul.msk.f32.vlgmr.msra.gmra.mxu0 %vm206_vm1, %v1111_v38  ;;  %v458_v47 = vpop.permute.xlu2 %457 }
  0xa0   : > { %1120 = vmatpush.msk.msrb.mxu0 %vm210_vm0, %v1426_v8  ;;  %1123 = vmatmul.msk.f32.vlgmr.msrb.gmra.mxu1 %vm206_vm1, %v186_v36 }
  0xa2   : > { %1129 = vmatpush.msk.msra.mxu0 %vm210_vm0, %v369_v42 }
  0xa6   : > { %v365_v48 = vpop.permute.xlu1 %364 }
  0xa7   : > { %v371_v49 = vsel %vm370_vm3, %v365_v48, %v367_v37  ;;  %1121 = vmatmul.msk.f32.vlgmr.msrb.gmra.mxu0 %vm206_vm1, %v186_v36  ;;  %v553_v50 = vpop.permute.xlu2 %552 }
  0xa8   : > { %1125 = vmatpush.msk.msrb.mxu2 %vm210_vm0, %v371_v49 }
  0xa9   : > { %1126 = vmatmul.msk.f32.vlgmr.msrb.gmra.mxu2 %vm206_vm1, %v1124_v43 }
  0xae   : > { %v462_v51 = vpop.permute.xlu1 %461  ;;  %v460_v52 = vpop.permute.xlu0 %459 }
  0xaf   : > { %v465_v54 = vsel %vm463_vm4, %v460_v52, %v462_v51  ;;  %v464_v55 = vsel %vm463_vm4, %v458_v47, %v460_v52  ;;  %1136 = vmatpush.msk.msra.mxu3 %vm210_vm0, %v462_v51  ;;  %1130 = vmatmul.msk.f32.vlgmr.msra.gmra.mxu0 %vm206_vm1, %v1124_v43  ;;  %v737_v56 = vpop.permute.xlu2 %736 }
  0xb0   : > { %1132 = vmatpush.msk.msra.mxu1 %vm210_vm0, %v464_v55  ;;  %1134 = vmatpush.msk.msra.mxu2 %vm210_vm0, %v465_v54  ;;  %v309_v26 = vpop.f32.mrf.mxu3 }
  0xb1   : > { %1135 = vmatmul.msk.f32.vlgmr.msra.gmra.mxu2 %vm206_vm1, %v1131_v53  ;;  %1133 = vmatmul.msk.f32.vlgmr.msra.gmra.mxu1 %vm206_vm1, %v1131_v53 }
  0xb2   : > { %1137 = vmatmul.msk.f32.vlgmr.msra.gmra.mxu3 %vm206_vm1, %v1131_v53 }
  0xb6   : > { %v555_v57 = vpop.permute.xlu0 %554  ;;  %v551_v58 = vpop.permute.xlu1 %550 }
  0xb7   : > { %v558_v60 = vsel %vm556_vm5, %v553_v50, %v555_v57  ;;  %v557_v61 = vsel %vm556_vm5, %v551_v58, %v553_v50  ;;  %1143 = vmatpush.msk.msrb.mxu2 %vm210_vm0, %v555_v57  ;;  %v741_v4 = vpop.permute.xlu2 %740 }
  0xb8   : > { %1139 = vmatpush.msk.msrb.mxu0 %vm210_vm0, %v557_v61  ;;  %1141 = vmatpush.msk.msrb.mxu1 %vm210_vm0, %v558_v60 }
  0xb9   : > { %1144 = vmatmul.msk.f32.vlgmr.msrb.gmra.mxu2 %vm206_vm1, %v1138_v59  ;;  %1140 = vmatmul.msk.f32.vlgmr.msrb.gmra.mxu0 %vm206_vm1, %v1138_v59 }
  0xba   : > { %1142 = vmatmul.msk.f32.vlgmr.msrb.gmra.mxu1 %vm206_vm1, %v1138_v59 }
  0xbe   : > { %v646_v0 = vpop.permute.xlu1 %645  ;;  %v644_v1 = vpop.permute.xlu0 %643 }
  0xbf   : > { %v650_v3 = vsel %vm649_vm6, %v644_v1, %v646_v0  ;;  %v830_v11 = vpop.permute.xlu2 %829 }
  0xc0   : > { %1146 = vmatpush.msk.msrb.mxu3 %vm210_vm0, %v650_v3 }
  0xc1   : > { %1147 = vmatmul.msk.f32.vlgmr.msrb.gmra.mxu3 %vm206_vm1, %v1145_v2 }
  0xc6   : > { %v648_v5 = vpop.permute.xlu1 %647  ;;  %v739_v6 = vpop.permute.xlu0 %738 }
  0xc7   : > { %v651_v7 = vsel %vm649_vm6, %v646_v0, %v648_v5  ;;  %v743_v8 = vsel %vm742_vm7, %v737_v56, %v739_v6  ;;  %v744_v9 = vsel %vm742_vm7, %v739_v6, %v741_v4  ;;  %1150 = vmatpush.msk.msra.mxu1 %vm210_vm0, %v648_v5  ;;  %v925_v17 = vpop.permute.xlu2 %924 }
  0xc8   : > { %1148 = vmatpush.msk.msra.mxu0 %vm210_vm0, %v651_v7  ;;  %1151 = vmatmul.msk.f32.vlgmr.msra.gmra.mxu1 %vm206_vm1, %v1145_v2 }
  0xc9   : > { %1153 = vmatpush.msk.msra.mxu2 %vm210_vm0, %v743_v8  ;;  %1155 = vmatpush.msk.msra.mxu3 %vm210_vm0, %v744_v9 }
  0xca   : > { %1149 = vmatmul.msk.f32.vlgmr.msra.gmra.mxu0 %vm206_vm1, %v1145_v2  ;;  %1154 = vmatmul.msk.f32.vlgmr.msra.gmra.mxu2 %vm206_vm1, %v1152_v10 }
  0xcb   : > { %1156 = vmatmul.msk.f32.vlgmr.msra.gmra.mxu3 %vm206_vm1, %v1152_v10  ;;  %1157 = vmatpush.msk.msrb.mxu0 %vm210_vm0, %v741_v4 }
  0xce   : > { %v834_v12 = vpop.permute.xlu1 %833  ;;  %v832_v13 = vpop.permute.xlu0 %831 }
  0xcf   : > { %v837_v15 = vsel %vm835_vm8, %v832_v13, %v834_v12  ;;  %v836_v16 = vsel %vm835_vm8, %v830_v11, %v832_v13  ;;  %1164 = vmatpush.msk.msrb.mxu3 %vm210_vm0, %v834_v12 }
  0xd0   : > { %1160 = vmatpush.msk.msrb.mxu1 %vm210_vm0, %v836_v16  ;;  %1162 = vmatpush.msk.msrb.mxu2 %vm210_vm0, %v837_v15 }
  0xd1   : > { %1161 = vmatmul.msk.f32.vlgmr.msrb.gmra.mxu1 %vm206_vm1, %v1159_v14 }
  0xd2   : > { %1158 = vmatmul.msk.f32.vlgmr.msrb.gmra.mxu0 %vm206_vm1, %v1152_v10  ;;  %1163 = vmatmul.msk.f32.vlgmr.msrb.gmra.mxu2 %vm206_vm1, %v1159_v14 }
  0xd3   : > { %1165 = vmatmul.msk.f32.vlgmr.msrb.gmra.mxu3 %vm206_vm1, %v1159_v14 }
  0xd6   : > { %v927_v18 = vpop.permute.xlu0 %926  ;;  %v923_v19 = vpop.permute.xlu1 %922 }
  0xd7   : > { %v930_v21 = vsel %vm928_vm9, %v925_v17, %v927_v18  ;;  %v929_v22 = vsel %vm928_vm9, %v923_v19, %v925_v17  ;;  %1171 = vmatpush.msk.msra.mxu2 %vm210_vm0, %v927_v18 }
  0xd8   : > { %1167 = vmatpush.msk.msra.mxu0 %vm210_vm0, %v929_v22  ;;  %1169 = vmatpush.msk.msra.mxu1 %vm210_vm0, %v930_v21 }
  0xd9   : > { %1170 = vmatmul.msk.f32.vlgmr.msra.gmra.mxu1 %vm206_vm1, %v1166_v20 }
  0xda   : > { %1168 = vmatmul.msk.f32.vlgmr.msra.gmra.mxu0 %vm206_vm1, %v1166_v20  ;;  %1172 = vmatmul.msk.f32.vlgmr.msra.gmra.mxu2 %vm206_vm1, %v1166_v20 }
  0xde   : > { %v1007_v2 = vpop.permute.xlu0 %1006 }
 0x115   : > { %v254_v23 = vpop.f32.mrf.mxu1 }
 0x119   : > { %v274_v25 = vpop.f32.mrf.mxu2 }
 0x11c   : > { %v234_v24 = vpop.f32.mrf.mxu0 }
 0x11d   : > { %v349_v27 = vpop.f32.mrf.mxu1  ;;  %v419_v30 = vpop.f32.mrf.mxu3  ;;  %v310_v37 = vadd.f32 %v309_v26, %v234_v24 }
 0x11e   : > { %v350_v48 = vadd.f32 %v349_v27, %v274_v25 }
 0x124   : > { %v329_v28 = vpop.f32.mrf.mxu0 }
 0x125   : > { %v330_v41 = vadd.f32 %v329_v28, %v254_v23 }
 0x127   : > { %v443_v44 = vadd.f32 %v419_v30, %v330_v41 }
 0x12c   : > { %v399_v29 = vpop.f32.mrf.mxu2  ;;  %v439_v32 = vpop.f32.mrf.mxu0 }
 0x12d   : > { %v442_v43 = vadd.f32 %v399_v29, %v310_v37  ;;  %v444_v55 = vadd.f32 %v439_v32, %v350_v48 }
 0x12e   : > { %v492_v31 = vpop.f32.mrf.mxu1 }
 0x12f   : > { %v535_v45 = vadd.f32 %v492_v31, %v442_v43 }
 0x134   : > { %v512_v33 = vpop.f32.mrf.mxu2 }
 0x135   : > { %v532_v34 = vpop.f32.mrf.mxu3  ;;  %v536_v46 = vadd.f32 %v512_v33, %v443_v44 }
 0x136   : > { %v585_v36 = vpop.f32.mrf.mxu0  ;;  %v537_v58 = vadd.f32 %v532_v34, %v444_v55 }
 0x137   : > { %v605_v35 = vpop.f32.mrf.mxu1  ;;  %v628_v49 = vadd.f32 %v585_v36, %v535_v45 }
 0x138   : > { %v629_v53 = vadd.f32 %v605_v35, %v536_v46 }
 0x13c   : > { %v625_v38 = vpop.f32.mrf.mxu2 }
 0x13d   : > { %v630_v61 = vadd.f32 %v625_v38, %v537_v58 }
 0x144   : > { %v678_v39 = vpop.f32.mrf.mxu3 }
 0x145   : > { %v718_v40 = vpop.f32.mrf.mxu1  ;;  %v721_v54 = vadd.f32 %v678_v39, %v628_v49 }
 0x146   : > { %v723_v3 = vadd.f32 %v718_v40, %v630_v61 }
 0x147   : > { %v698_v42 = vpop.f32.mrf.mxu0 }
 0x148   : > { %v722_v56 = vadd.f32 %v698_v42, %v629_v53 }
 0x14d   : > { %v771_v47 = vpop.f32.mrf.mxu2 }
 0x14e   : > { %v864_v50 = vpop.f32.mrf.mxu1  ;;  %v791_v51 = vpop.f32.mrf.mxu3  ;;  %v814_v57 = vadd.f32 %v771_v47, %v721_v54 }
 0x14f   : > { %v811_v52 = vpop.f32.mrf.mxu0  ;;  %v815_v59 = vadd.f32 %v791_v51, %v722_v56 }
 0x150   : > { %v907_v62 = vadd.f32 %v864_v50, %v814_v57  ;;  %v816_v7 = vadd.f32 %v811_v52, %v723_v3 }
 0x155   : > { %v884_v60 = vpop.f32.mrf.mxu2 }
 0x156   : > { %v908_v63 = vadd.f32 %v884_v60, %v815_v59  ;;  %v977_v0 = vpop.f32.mrf.mxu1  ;;  %v904_v6 = vpop.f32.mrf.mxu3 }
 0x157   : > { %v957_v1 = vpop.f32.mrf.mxu0  ;;  %v909_v10 = vadd.f32 %v904_v6, %v816_v7 }
 0x158   : > { %v1000_v4 = vadd.f32 %v957_v1, %v907_v62  ;;  %v1001_v5 = vadd.f32 %v977_v0, %v908_v63 }
 0x15a   : > { %v1009_v8 = vadd.f32 %v1007_v2, %v1000_v4  ;;  %v1010_v9 = vadd.f32 %v1007_v2, %v1001_v5 }
 0x15c   : > { %1012 = vst [vmem:[%s177_s4] sm:$0xff] %v1009_v8 }
 0x15d   : > { %1013 = vst [vmem:[%s177_s4 + $0x8] sm:$0xff] %v1010_v9  ;;  %v997_v11 = vpop.f32.mrf.mxu2 }
 0x15e   : > { %v1002_v12 = vadd.f32 %v997_v11, %v909_v10 }
 0x160   : > { %v1011_v13 = vadd.f32 %v1007_v2, %v1002_v12 }
 0x162   : > { %1015 = vst.msk [vmem:[%s177_s4 + $0x10] sm:$0xff] %vm1014_vm10, %v1011_v13 }
 0x163   : > { %1271 = shalt.err (!%p1268_p5)
}
 0x164   : > { %1179 = dma.vmem_to_hbm [thread:$0]  (%p1393_p4), %s1033_s15, 384, %s1035_s5, %s1017_s6  }
 0x165 PF: > { %p1185_p6 = scmp.ge.s32.totalorder %s1322_s17, 2  ;;  %s1046_s21 = sand.u32 1, %s1302_s12  }
 0x166   : > { %s1047_s23 = scalar_lea.sflag [#allocation3], %s1046_s21 }
 0x167   : > { %p1182_p7 = pnand %p1185_p6, %p1400_p8 }
 0x169   : > { %p1183_p9 = pneg %p1182_p7 }
 0x16b   : > { %1297 = dma.done.wait (%p1183_p9), %s1047_s23, 384  }
 0x16c   : > { %1299 = vsyncadd (%p1183_p9), %s1047_s23, 4294966912  ;;  %s16_s17 = sadd.s32 1, %s1322_s17   ;;  %s1579_s12 = smov %s1306_s13 }
 0x16d   : > { %p13_p10 = scmp.ge.s32.totalorder %s16_s17, 4   ;;  %s1580_s13 = smov %s1310_s14 }
 0x16e   : > { %s1581_s14 = smov %s1406_s25  ;;  %s1582_s15 = smov %s1318_s16 }
 0x16f   : > { %s1583_s16 = smov %s1585_s20  ;;  %15 = sbr.rel (!%p13_p10) target bundleno = 4 (0x4), region = 84 }
 0x174   :  { %1053 = vsyncpa [#allocation3], 1 }
 0x175   :  { %1055 = vsyncpa [#allocation3 + $0x1], 1 }

</bundles_post_ra>
